<compile_context>
chip_gen: v5e
topology: v5e:2x2
jax: 0.10.0
libtpu: 0.0.40
codegen_flags: <defaults>
</compile_context>

<pallas_src>
import jax
import jax.numpy as jnp
from jax.experimental import pallas as pl
from jax.experimental.pallas import tpu as pltpu


def _round_up(v, m):
    return ((v + m - 1) // m) * m


def _vmem_capacity_bytes():
    try:
        return int(pltpu.get_tpu_info().vmem_capacity_bytes)
    except Exception:
        return 64 * 2**20  # conservative fallback (v7x per-TC VMEM)


def _token_mixer_kernel(x_ref, wt_ref, bt_ref, wpT_ref, bp_ref, o_ref, mixed_ref):
    # x_ref:     (Bt, L_in, D_in)       batch tile (compute dtype)
    # wt_ref:    (L_out_pad, L_in)      token-mixer weight (compute dtype)
    # bt_ref:    (L_out_pad, 1)  f32    token-mixer bias
    # wpT_ref:   (D_in, TN)             proj weight tile, pre-transposed
    # bp_ref:    (1, TN)         f32    proj bias tile
    # o_ref:     (Bt, L_out_pad, TN)
    # mixed_ref: (Bt*L_out_pad, D_in)   VMEM scratch, persists across the j axis
    Bt = x_ref.shape[0]
    L_out = wt_ref.shape[0]

    # Token mixing: computed only for the first D_out tile of each batch tile,
    # then reused for all remaining j tiles via the VMEM scratch.
    @pl.when(pl.program_id(1) == 0)
    def _mix():
        wt = wt_ref[...]
        bt = bt_ref[...]
        for b in range(Bt):  # Bt is small and static -> cheap unroll of 2-D dots
            m = jnp.dot(wt, x_ref[b], preferred_element_type=jnp.float32) + bt
            mixed_ref[b * L_out:(b + 1) * L_out, :] = m.astype(mixed_ref.dtype)

    # Channel projection: one fat 2-D dot, M = Bt*L_out_pad, f32 accumulation.
    proj = jnp.dot(mixed_ref[...], wpT_ref[...],
                   preferred_element_type=jnp.float32)          # (Bt*L_out, TN)
    proj = proj + bp_ref[...]                                   # f32 bias
    o_ref[...] = proj.reshape(o_ref.shape).astype(o_ref.dtype)  # layout no-op


def token_mixer_forward(x, w_token, b_token, w_proj, b_proj, *,
                        compute_dtype=jnp.bfloat16, block_b=None, block_n=None):
    """Pallas implementation of TokenMixer.forward.

    x:       (B, L_in, D_in) or (L_in, D_in)
    w_token: (L_out, L_in),  b_token: (L_out,)
    w_proj:  (D_out, D_in),  b_proj:  (D_out,)
    returns: (B, L_out, D_out) in x.dtype
    """
    if x.ndim == 2:            # matches data.unsqueeze(0) in mix()
        x = x[None]
    B, L_in, D_in = x.shape
    L_out, L_in_w = w_token.shape
    D_out, D_in_w = w_proj.shape
    assert L_in_w == L_in and D_in_w == D_in

    cdt = jnp.dtype(compute_dtype) if compute_dtype is not None else jnp.dtype(x.dtype)
    itemsize = cdt.itemsize
    out_itemsize = jnp.dtype(x.dtype).itemsize

    # Pad L_out to a sublane multiple so in-kernel reshapes are layout no-ops.
    L_out_pad = _round_up(L_out, 8)

    # ---- generation-aware sizing ----------------------------------------
    vmem_cap = _vmem_capacity_bytes()
    vmem_ceiling = (vmem_cap * 3) // 4          # leave headroom for Mosaic scratch

    # Output-channel tile: lane-dense, as large as the wpT double-buffer allows
    # (whole W_p^T resident -> single j tile -> no scratch refill at all).
    if block_n is None:
        full = _round_up(D_out, 128)
        wp_budget = max(1 << 20, vmem_cap // 8)
        tn_max = max(128, ((wp_budget // (2 * D_in * itemsize)) // 128) * 128)
        TN = 128
        for cand in (full, 2048, 1024, 512, 256, 128):
            if cand <= tn_max and cand <= full:
                TN = cand
                break
    else:
        TN = _round_up(max(int(block_n), 1), 128)

    # Batch tile: fatten the projection M-dim (Bt*L_out >= 256) within an x cap.
    if block_b is None:
        target = max(1, -(-256 // max(1, L_out_pad)))
        x_cap_bytes = max(2 << 20, vmem_cap // 16)
        cap = max(1, x_cap_bytes // max(1, L_in * D_in * itemsize))
        Bt = max(1, min(B, target, cap))
        if B >= 2:
            Bt = min(Bt, max(1, B // 2))   # keep >= 2 batch tiles for 2-TC chips
    else:
        Bt = max(1, int(block_b))

    def _est_vmem(bt, tn):
        return (2 * bt * L_in * D_in * itemsize                         # x blocks
                + 2 * (L_out_pad * L_in * itemsize + L_out_pad * 4)     # wt, bt
                + 2 * (D_in * tn * itemsize + tn * 4)                   # wpT, bp
                + 2 * bt * L_out_pad * tn * out_itemsize                # out blocks
                + bt * L_out_pad * D_in * itemsize)                     # mixed scratch

    # Shrink tiles if the estimate overshoots the per-core budget.
    while _est_vmem(Bt, TN) > vmem_ceiling and (TN > 128 or Bt > 1):
        if TN > 128:
            TN = max(128, ((TN // 2) // 128) * 128)
        else:
            Bt = max(1, Bt // 2)

    D_out_pad = _round_up(D_out, TN)
    B_pad = _round_up(B, Bt)

    # ---- operand prep (glue, plain JAX) ----------------------------------
    x_c = x.astype(cdt)
    wt = w_token.astype(cdt)                                  # (L_out, L_in)
    wpT = jnp.transpose(w_proj).astype(cdt)                   # (D_in, D_out)
    bt2 = b_token.reshape(L_out, 1).astype(jnp.float32)
    bp2 = b_proj.reshape(1, D_out).astype(jnp.float32)

    if L_out_pad != L_out:
        wt = jnp.pad(wt, ((0, L_out_pad - L_out), (0, 0)))
        bt2 = jnp.pad(bt2, ((0, L_out_pad - L_out), (0, 0)))
    if B_pad != B:
        x_c = jnp.pad(x_c, ((0, B_pad - B), (0, 0), (0, 0)))
    if D_out_pad != D_out:
        wpT = jnp.pad(wpT, ((0, 0), (0, D_out_pad - D_out)))
        bp2 = jnp.pad(bp2, ((0, 0), (0, D_out_pad - D_out)))

    num_b_tiles = B_pad // Bt
    num_j_tiles = D_out_pad // TN
    grid = (num_b_tiles, num_j_tiles)

    grid_spec = pltpu.PrefetchScalarGridSpec(
        num_scalar_prefetch=0,
        grid=grid,
        in_specs=[
            pl.BlockSpec((Bt, L_in, D_in), lambda b, j: (b, 0, 0)),
            pl.BlockSpec((L_out_pad, L_in), lambda b, j: (0, 0)),
            pl.BlockSpec((L_out_pad, 1), lambda b, j: (0, 0)),
            pl.BlockSpec((D_in, TN), lambda b, j: (0, j)),
            pl.BlockSpec((1, TN), lambda b, j: (0, j)),
        ],
        out_specs=pl.BlockSpec((Bt, L_out_pad, TN), lambda b, j: (b, 0, j)),
        scratch_shapes=[pltpu.VMEM((Bt * L_out_pad, D_in), cdt)],
    )

    est_vmem = _est_vmem(Bt, TN)
    vmem_limit = int(min(vmem_ceiling, max(16 << 20, int(1.25 * est_vmem))))

    # Cost estimate matching the actual schedule: token-mix once per batch tile,
    # projection once per (b, j); wpT is re-streamed per batch tile unless it is
    # fully resident (single j tile).
    flops = int(2 * B_pad * L_out_pad * L_in * D_in
                + 2 * B_pad * L_out_pad * D_in * D_out_pad)
    wp_stream = (num_b_tiles if num_j_tiles > 1 else 1) * D_in * D_out_pad * itemsize
    bytes_accessed = int(B_pad * L_in * D_in * itemsize
                         + L_out_pad * L_in * itemsize + L_out_pad * 4
                         + wp_stream + D_out_pad * 4
                         + B_pad * L_out_pad * D_out_pad * out_itemsize)

    out = pl.pallas_call(
        _token_mixer_kernel,
        out_shape=jax.ShapeDtypeStruct((B_pad, L_out_pad, D_out_pad), x.dtype),
        grid_spec=grid_spec,
        compiler_params=pltpu.CompilerParams(
            dimension_semantics=("parallel", "arbitrary"),
            vmem_limit_bytes=vmem_limit),
        cost_estimate=pl.CostEstimate(flops=flops, transcendentals=0,
                                      bytes_accessed=bytes_accessed),
    )(x_c, wt, bt2, wpT, bp2)

    return out[:B, :L_out, :D_out]


def token_mixer_reference(x, w_token, b_token, w_proj, b_proj):
    """Plain-JAX (f32) reference mirroring the PyTorch module."""
    if x.ndim == 2:
        x = x[None]
    mixed = jnp.einsum('bld,ol->bod', x, w_token) + b_token[None, :, None]
    return jnp.einsum('bod,pd->bop', mixed, w_proj) + b_proj[None, None, :]


if __name__ == "__main__":
    # Small shapes consistent with the module (in_tokens, out_tokens, in_channels, out_channels)
    B, in_tokens, out_tokens = 2, 8, 16
    in_channels, out_channels = 32, 64

    key = jax.random.PRNGKey(0)
    k_x, k_wt, k_bt, k_wp, k_bp = jax.random.split(key, 5)

    x = jax.random.normal(k_x, (B, in_tokens, in_channels), dtype=jnp.float32)
    # nn.Linear-like parameter shapes: weight (out, in), bias (out,)
    w_token = jax.random.normal(k_wt, (out_tokens, in_tokens), dtype=jnp.float32) * 0.1
    b_token = jax.random.normal(k_bt, (out_tokens,), dtype=jnp.float32) * 0.1
    w_proj = jax.random.normal(k_wp, (out_channels, in_channels), dtype=jnp.float32) * 0.1
    b_proj = jax.random.normal(k_bp, (out_channels,), dtype=jnp.float32) * 0.1

    out = token_mixer_forward(x, w_token, b_token, w_proj, b_proj)
    out = jax.block_until_ready(out)

    ref = token_mixer_reference(x, w_token, b_token, w_proj, b_proj)
    assert out.shape == (B, out_tokens, out_channels), out.shape
    err = float(jnp.max(jnp.abs(out - ref)))
    # Tolerance accounts for the default bf16 compute dtype (f32 accumulation).
    assert jnp.allclose(out, ref, atol=3e-2, rtol=3e-2), f"max abs err {err}"

    print("KERNEL_OK")
</pallas_src>

<mosaic_0001>
module attributes {stable_mosaic.version = 11 : i64} {
  func.func @_token_mixer_kernel(%arg0: i32, %arg1: i32, %arg2: memref<1x8x32xbf16, #tpu.memory_space<vmem>>, %arg3: memref<16x8xbf16, #tpu.memory_space<vmem>>, %arg4: memref<16x1xf32, #tpu.memory_space<vmem>>, %arg5: memref<32x128xbf16, #tpu.memory_space<vmem>>, %arg6: memref<1x128xf32, #tpu.memory_space<vmem>>, %arg7: memref<1x16x128xf32, #tpu.memory_space<vmem>>, %arg8: memref<16x32xbf16, #tpu.memory_space<vmem>>) attributes {dimension_semantics = [#tpu.dimension_semantics<parallel>, #tpu.dimension_semantics<arbitrary>], iteration_bounds = array<i64: 2, 1>, scalar_prefetch = 0 : i64, scratch_operands = 1 : i64, tpu.core_type = #tpu.core_type<tc>, window_params = [{transform_indices = @transform_0, window_bounds = array<i64: 1, 8, 32>}, {pipeline_mode = #tpu.pipeline_mode<synchronous>, transform_indices = @transform_1, window_bounds = array<i64: 16, 8>}, {pipeline_mode = #tpu.pipeline_mode<synchronous>, transform_indices = @transform_2, window_bounds = array<i64: 16, 1>}, {transform_indices = @transform_3, window_bounds = array<i64: 32, 128>}, {transform_indices = @transform_4, window_bounds = array<i64: 1, 128>}, {transform_indices = @transform_5, window_bounds = array<i64: 1, 16, 128>}]} {
    %c0_i32 = arith.constant 0 : i32
    %0 = arith.cmpi eq, %arg1, %c0_i32 : i32
    %1 = arith.extui %0 : i1 to i32
    %c0_i32_0 = arith.constant 0 : i32
    %2 = arith.cmpi ne, %1, %c0_i32_0 : i32
    scf.if %2 {
      %c0_9 = arith.constant 0 : index
      %c0_10 = arith.constant 0 : index
      %11 = vector.load %arg3[%c0_9, %c0_10] : memref<16x8xbf16, #tpu.memory_space<vmem>>, vector<16x8xbf16>
      %c0_11 = arith.constant 0 : index
      %c0_12 = arith.constant 0 : index
      %12 = vector.load %arg4[%c0_11, %c0_12] : memref<16x1xf32, #tpu.memory_space<vmem>>, vector<16x1xf32>
      %c0_13 = arith.constant 0 : index
      %c0_14 = arith.constant 0 : index
      %c0_15 = arith.constant 0 : index
      %13 = vector.load %arg2[%c0_13, %c0_14, %c0_15] : memref<1x8x32xbf16, #tpu.memory_space<vmem>>, vector<1x8x32xbf16>
      %14 = vector.shape_cast %13 : vector<1x8x32xbf16> to vector<8x32xbf16>
      %cst_16 = arith.constant dense<0.000000e+00> : vector<16x32xf32>
      %15 = tpu.matmul %11, %14, %cst_16 {dimension_numbers = #tpu.dot_dimension_numbers<[1], [0], [0], [1], [0, 0, 1, 1], [], []>} : vector<16x8xbf16>, vector<8x32xbf16>, vector<16x32xf32> -> vector<16x32xf32>
      %16 = vector.broadcast %12 : vector<16x1xf32> to vector<16x32xf32>
      %17 = arith.addf %15, %16 : vector<16x32xf32>
      %18 = arith.truncf %17 : vector<16x32xf32> to vector<16x32xbf16>
      %c0_17 = arith.constant 0 : index
      %c0_18 = arith.constant 0 : index
      %19 = vector.load %arg8[%c0_17, %c0_18] : memref<16x32xbf16, #tpu.memory_space<vmem>>, vector<16x32xbf16>
      tpu.vector_store %arg8[%c0_17, %c0_18], %18 {strides = array<i32>} : memref<16x32xbf16, #tpu.memory_space<vmem>>, vector<16x32xbf16>,
    } else {
    }
    %c0 = arith.constant 0 : index
    %c0_1 = arith.constant 0 : index
    %3 = vector.load %arg8[%c0, %c0_1] : memref<16x32xbf16, #tpu.memory_space<vmem>>, vector<16x32xbf16>
    %c0_2 = arith.constant 0 : index
    %c0_3 = arith.constant 0 : index
    %4 = vector.load %arg5[%c0_2, %c0_3] : memref<32x128xbf16, #tpu.memory_space<vmem>>, vector<32x128xbf16>
    %cst = arith.constant dense<0.000000e+00> : vector<16x128xf32>
    %5 = tpu.matmul %3, %4, %cst {dimension_numbers = #tpu.dot_dimension_numbers<[1], [0], [0], [1], [0, 0, 1, 1], [], []>} : vector<16x32xbf16>, vector<32x128xbf16>, vector<16x128xf32> -> vector<16x128xf32>
    %c0_4 = arith.constant 0 : index
    %c0_5 = arith.constant 0 : index
    %6 = vector.load %arg6[%c0_4, %c0_5] : memref<1x128xf32, #tpu.memory_space<vmem>>, vector<1x128xf32>
    %7 = vector.broadcast %6 : vector<1x128xf32> to vector<16x128xf32>
    %8 = arith.addf %5, %7 : vector<16x128xf32>
    %9 = vector.shape_cast %8 : vector<16x128xf32> to vector<1x16x128xf32>
    %c0_6 = arith.constant 0 : index
    %c0_7 = arith.constant 0 : index
    %c0_8 = arith.constant 0 : index
    %10 = vector.load %arg7[%c0_6, %c0_7, %c0_8] : memref<1x16x128xf32, #tpu.memory_space<vmem>>, vector<1x16x128xf32>
    tpu.vector_store %arg7[%c0_6, %c0_7, %c0_8], %9 {strides = array<i32>} : memref<1x16x128xf32, #tpu.memory_space<vmem>>, vector<1x16x128xf32>,
    return
  }
  func.func @transform_0(%arg0: i32, %arg1: i32) -> (i32, i32, i32) {
    %c0_i32 = arith.constant 0 : i32
    %c0_i32_0 = arith.constant 0 : i32
    %c0_i32_1 = arith.constant 0 : i32
    return %arg0, %c0_i32, %c0_i32_0 : i32, i32, i32
  }
  func.func @transform_1(%arg0: i32, %arg1: i32) -> (i32, i32) {
    %c0_i32 = arith.constant 0 : i32
    %c0_i32_0 = arith.constant 0 : i32
    %c0_i32_1 = arith.constant 0 : i32
    return %c0_i32, %c0_i32_0 : i32, i32
  }
  func.func @transform_2(%arg0: i32, %arg1: i32) -> (i32, i32) {
    %c0_i32 = arith.constant 0 : i32
    %c0_i32_0 = arith.constant 0 : i32
    %c0_i32_1 = arith.constant 0 : i32
    return %c0_i32, %c0_i32_0 : i32, i32
  }
  func.func @transform_3(%arg0: i32, %arg1: i32) -> (i32, i32) {
    %c0_i32 = arith.constant 0 : i32
    %c0_i32_0 = arith.constant 0 : i32
    return %c0_i32, %arg1 : i32, i32
  }
  func.func @transform_4(%arg0: i32, %arg1: i32) -> (i32, i32) {
    %c0_i32 = arith.constant 0 : i32
    %c0_i32_0 = arith.constant 0 : i32
    return %c0_i32, %arg1 : i32, i32
  }
  func.func @transform_5(%arg0: i32, %arg1: i32) -> (i32, i32, i32) {
    %c0_i32 = arith.constant 0 : i32
    %c0_i32_0 = arith.constant 0 : i32
    return %arg0, %c0_i32, %arg1 : i32, i32, i32
  }
}

</mosaic_0001>

<bundles_post_ra>
// kernel: tpu_custom_call.1
= control target key start
LH: loop header
LB: loop body
LE: loop exit
PB: predicated region body
PF: predicated region fallthrough
CT: control target
= control target key end

     0   :  { %10 = vsyncpa [#allocation4], 0  ;;  %s805_s0 = inlined_call_operand.vmem [shape: bf16[2,8,32], index: 0, kind: input, shape index: {}]   ;;  %s806_s1 = inlined_call_operand.vmem [shape: bf16[16,8], index: 1, kind: input, shape index: {}]   ;;  %s807_s2 = inlined_call_operand.vmem [shape: f32[16,1], index: 2, kind: input, shape index: {}]   ;;  %s808_s3 = inlined_call_operand.vmem [shape: bf16[32,128], index: 3, kind: input, shape index: {}]   ;;  %s809_s4 = inlined_call_operand.vmem [shape: f32[1,128], index: 4, kind: input, shape index: {}]   ;;  %s810_s5 = inlined_call_operand.hbm [shape: f32[2,16,128], index: 5, kind: output, shape index: {}]  }
   0x1   :  { %12 = vsyncpa [#allocation4 + $0x1], 0  ;;  %s690_s18 = smov 0   ;;  %s692_s19 = smov 0  }
   0x2   :  { %s694_s20 = smov 0   ;;  %s696_s21 = smov 0  }
   0x3   :  { %s698_s22 = smov 0   ;;  %s700_s23 = smov 0  }
   0x4 LB: > { %s480_s24 = sadd.s32 4294967295, %s655_s23   ;;  %s481_s25 = sadd.s32 4294967294, %s655_s23   ;;  %s655_s23 = sphi %s700_s23, %s18_s23   ;;  %s651_s22 = sphi %s698_s22, %s817_s22   ;;  %s647_s21 = sphi %s696_s21, %s816_s21   ;;  %s643_s20 = sphi %s694_s20, %s815_s20   ;;  %s639_s19 = sphi %s692_s19, %s814_s19   ;;  %s635_s18 = sphi %s690_s18, %s813_s18  }
   0x5   : > { %s30_s26 = sadd.s32 1, %s651_s22  ;;  %s159_s27 = sadd.s32 1, %s643_s20 }
   0x6   : > { %p32_p0 = scmp.ge.s32.totalorder %s30_s26, 2  ;;  %p169_p1 = scmp.ne.s32.totalorder %s643_s20, %s639_s19 }
   0x7   : > { %p170_p2 = scmp.eq.s32.totalorder %s480_s24, 1  ;;  %p175_p3 = scmp.ne.s32.totalorder %s639_s19, %s635_s18 }
   0x8   : > { %s819_s26 = smov (%p32_p0, %s30_s26), 0  ;;  %p176_p5 = scmp.eq.s32.totalorder %s481_s25, 1 }
   0x9   : > { %p730_p4 = por %p170_p2, %p169_p1  ;;  %s154_s29 = ssub.s32 %s651_s22, %s819_s26 }
   0xa   : > { %p486_p6 = scmp.ge.s32.totalorder %s655_s23, 1  ;;  %p157_p7 = scmp.eq.s32.totalorder %s154_s29, 0 }
   0xb   : > { %p737_p8 = por %p176_p5, %p175_p3  ;;  %p220_p9 = scmp.lt.s32.totalorder %s655_s23, 3 }
   0xc   : > { %s743_s6 = scalar_select %p157_p7, %s643_s20, %s159_s27  }
   0xd   : > { %p221_p10 = pnand %p486_p6, %p220_p9 }
   0xe   : > { %p254_p11 = scmp.lt.s32.totalorder (!%p221_p10), %s647_s21, 1  ;;  %s251_s7 = sand.u32 (!%p221_p10), 1, %s639_s19  }
   0xf   : > { %224 = sbr.rel (%p221_p10) target bundleno = 315 (0x13b), region = 40  ;;  %s487_s8 = sshll.u32 (!%p221_p10), %s251_s7, 4 }
  0x10   : > { %s516_s11 = sshll.u32 (!%p221_p10), %s647_s21, 4  ;;  %s253_s15 = scalar_lea.vmem (!%p221_p10), [#allocation3], %s487_s8 }
  0x11   : > { %s377_s14 = scalar_lea.hbm (!%p221_p10), %s810_s5, %s516_s11  ;;  %s378_s16 = sshll.u32 (!%p221_p10), %s253_s15, 4  ;;  %s379_s16 = int_to_ptr.vmem [resolvable:$true] %s378_s16 }
  0x12   : > { %s380_s17 = sshll.u32 (!%p221_p10), %s377_s14, 4  ;;  %s365_s24 = scalar_lea.sflag (!%p221_p10), [#allocation4], %s251_s7  ;;  %s381_s17 = int_to_ptr.hbm [resolvable:$true] %s380_s17 }
  0x13   : > { %s591_s25 = sshra.s32 (!%p221_p10), %s381_s17, 4  ;;  %s597_s8 = scalar_lea.hbm (!%p221_p10), %s810_s5, 32  ;;  %s592_s25 = int_to_ptr.hbm [resolvable:$true] %s591_s25 }
  0x14   : > { %v272_v0 = vld [vmem:[%s807_s2] sm:$0xff]  ;;  %v657_v1 = vmov 0   ;;  %s255_s9 = scalar_select %p254_p11, %s647_s21, 1  ;;  %vm294_vm0 = vcmask 1043456   ;;  %v273_v5 = vld [vmem:[%s807_s2 + $0x8] sm:$0xff]  ;;  %vm290_vm1 = vcmask 64512  }
  0x15   : > { %575 = vset.pattern.permute.xlu0 %v657_v1  ;;  %v512_v4 = vld [vmem:[%s806_s1] sm:$0xff]  ;;  %v515_v6 = vld [vmem:[%s808_s3 + $0x8] sm:$0xff]  ;;  %vm314_vm2 = vcmask 257024   ;;  %vm344_vm3 = vcmask 261120   ;;  %s593_s21 = scalar_lea.hbm %s592_s25, 16  ;;  %p598_p1 = scmp.lt.s32.totalorder %s592_s25, %s810_s5 }
  0x16   : > { %277 = vperm.xlu0 %575, %v272_v0   ;;  %s488_s10 = sshll.u32 %s255_s9, 2  ;;  %354 = vmatpush.bf16.msra.mxu1 %v515_v6  ;;  %v514_v7 = vld [vmem:[%s808_s3] sm:$0xff]  ;;  %p594_p12 = scmp.ne.s32.totalorder %s592_s25, %s593_s21 }
  0x17   : > { %s257_s13 = scalar_lea.vmem %s805_s0, %s488_s10  ;;  %v576_v17 = vld [vmem:[%s809_s4] ss:$0 sm:$0xff]  ;;  %p599_p2 = scmp.lt.s32.totalorder %s597_s8, %s593_s21 }
  0x18   : > { %v274_v2 = vld [vmem:[%s257_s13] sm:$0xf]  ;;  %p595_p13 = pnand %p594_p12, %p730_p4 }
  0x19   : > { %v296_v3 = vsel %vm294_vm0, %v274_v2, 0  ;;  %p600_p3 = por %p599_p2, %p598_p1 }
  0x1a   : > { %305 = vmatpush.bf16.msra.mxu0 %v296_v3  ;;  %355 = vmatpush.bf16.msra.mxu1 %v514_v7  ;;  %p596_p0 = pneg %p595_p13 }
  0x1c   : > { %p601_p5 = pnand %p600_p3, %p596_p0 }
  0x1d   : > { %493 = vmatmul.msk.bf16.vlgmr.msra.gmra.mxu0 %vm290_vm1, %v512_v4 }
  0x1e   : > { %282 = vperm.xlu0 %575, %v273_v5  }
  0x88   : > { %v278_v8 = vpop.permute.xlu0 %277 }
  0x90   : > { %v283_v12 = vpop.permute.xlu0 %282 }
  0x9a   : > { %v307_v9 = vpop.f32.mrf.mxu0 }
  0x9b   : > { %v308_v10 = vadd.f32 %v307_v9, %v278_v8 }
  0x9d   : > { %v312_v11 = vpack.c.bf16 %v308_v10, %v308_v10 }
  0x9f   : > { %315 = vst.msk [vmem:[#allocation2] sm:$0xf] %vm314_vm2, %v312_v11 }
  0xa2   : > { %v309_v13 = vpop.f32.mrf.mxu0 }
  0xa3   : > { %v310_v14 = vadd.f32 %v309_v13, %v283_v12 }
  0xa5   : > { %v313_v15 = vpack.c.bf16 %v310_v14, %v310_v14 }
  0xa7   : > { %316 = vst.msk [vmem:[#allocation2 + $0x4] sm:$0xf] %vm314_vm2, %v313_v15 }
  0xae   : > { %v513_v16 = vld [vmem:[#allocation2] sm:$0xff] }
  0xaf   : > { %506 = vmatmul.msk.bf16.vlgmr.msra.gmra.mxu1 %vm344_vm3, %v513_v16 }
 0x12c   : > { %v357_v18 = vpop.f32.mrf.mxu1 }
 0x12d   : > { %v358_v19 = vadd.f32 %v576_v17, %v357_v18 }
 0x12f   : > { %362 = vst [vmem:[%s253_s15] sm:$0xff] %v358_v19 }
 0x134   : > { %v359_v20 = vpop.f32.mrf.mxu1 }
 0x135   : > { %v360_v21 = vadd.f32 %v576_v17, %v359_v20 }
 0x137   : > { %363 = vst [vmem:[%s253_s15 + $0x8] sm:$0xff] %v360_v21 }
 0x138   : > { %604 = shalt.err (!%p601_p5)
}
 0x139   : > { %s658_s7 = smov 128   ;;  %s659_s11 = smov 8  }
 0x13a   : > { %517 = dma.vmem_to_hbm [thread:$0]  (%p730_p4), %s379_s16, 256, %s381_s17, %s365_s24, %s658_s7, %s658_s7, %s659_s11  }
 0x13b PF: > { %p523_p6 = scmp.ge.s32.totalorder %s655_s23, 2  ;;  %s395_s12 = sand.u32 1, %s635_s18  }
 0x13c   : > { %s396_s13 = scalar_lea.sflag [#allocation4], %s395_s12 }
 0x13d   : > { %p520_p7 = pnand %p523_p6, %p737_p8 }
 0x13f   : > { %p521_p9 = pneg %p520_p7 }
 0x141   : > { %630 = dma.done.wait (%p521_p9), %s396_s13, 256  }
 0x142   : > { %632 = vsyncadd (%p521_p9), %s396_s13, 4294967040  ;;  %s18_s23 = sadd.s32 1, %s655_s23   ;;  %s813_s18 = smov %s639_s19 }
 0x143   : > { %p15_p10 = scmp.ge.s32.totalorder %s18_s23, 4   ;;  %s814_s19 = smov %s643_s20 }
 0x144   : > { %s815_s20 = smov %s743_s6  ;;  %s816_s21 = smov %s651_s22 }
 0x145   : > { %s817_s22 = smov %s819_s26  ;;  %17 = sbr.rel (!%p15_p10) target bundleno = 4 (0x4), region = 85 }
 0x14a   :  { %402 = vsyncpa [#allocation4], 1 }
 0x14b   :  { %404 = vsyncpa [#allocation4 + $0x1], 1 }

</bundles_post_ra>
